<compile_context>
chip_gen: v6e
topology: v6e:2x2x1
jax: 0.10.0
libtpu: 0.0.40
codegen_flags: <defaults>
</compile_context>

<pallas_src>
import functools
import math

import jax
import jax.numpy as jnp
from jax.experimental import pallas as pl
from jax.experimental.pallas import tpu as pltpu

_MIB = 1024 * 1024


# ----------------------------------------------------------------------------
# Weight construction (host/trace time, tiny).
# ----------------------------------------------------------------------------
def _aa_linear_weights(in_size: int, out_size: int) -> jnp.ndarray:
    """Dense (out_size, in_size) 1-D anti-aliased linear resampling weights,
    align_corners=True convention."""
    if out_size > 1:
        scale = (in_size - 1) / (out_size - 1)
    else:
        scale = 0.0  # TODO(synk): verify degenerate out_size==1 case vs PyTorch.
    inv_s = 1.0 / scale if scale >= 1.0 else 1.0   # widen filter only when downsampling
    i = jnp.arange(out_size, dtype=jnp.float32)[:, None]   # output index
    p = jnp.arange(in_size, dtype=jnp.float32)[None, :]    # input pixel index
    center = i * jnp.float32(scale)                         # align_corners=True
    w = jnp.maximum(1.0 - jnp.abs(p - center) * jnp.float32(inv_s), 0.0)
    w = w / jnp.sum(w, axis=1, keepdims=True)               # renormalize rows
    # TODO(synk): PyTorch's aten _upsample_bilinear2d_aa tap placement/normalization
    # at image borders may differ very slightly from this zero+renormalize build.
    return w                                                # (out, in)


def _vmem_capacity_bytes() -> int:
    try:
        return int(pltpu.get_tpu_info().vmem_capacity_bytes)
    except Exception:
        return 64 * _MIB          # conservative fallback (v7x per-TensorCore VMEM)


# ----------------------------------------------------------------------------
# Channel-block sizing (honest VMEM accounting: double-buffered tiles + f32 temps).
# ----------------------------------------------------------------------------
def _choose_channels_kron(nc, hw, ohow, x_item, w_item, budget):
    per_ch = 2 * hw * x_item + 2 * ohow * x_item + ohow * 4   # dbl-buf in/out + f32 acc
    fixed = 2 * hw * ohow * w_item                            # dbl-buf resident weight
    avail = max(budget - fixed, per_ch)
    tb = int(max(1, min(nc, avail // per_ch)))
    if tb >= nc:
        return nc, 1                        # single block: best for v5e/v6e single-TC
    tb = max(8, (tb // 8) * 8)              # multi-block: sublane-aligned channel tile
    num_blocks = -(-nc // tb)
    if num_blocks > 1 and num_blocks % 2:   # v7x megacore: prefer a balanced grid
        alt_tb = max(8, ((-(-nc // (num_blocks + 1)) + 7) // 8) * 8)
        alt_blocks = -(-nc // alt_tb)
        if alt_blocks % 2 == 0:
            tb, num_blocks = alt_tb, alt_blocks
    return tb, num_blocks


def _choose_channels_separable(nc, h, w, oh, ow, x_item, w_item, budget):
    # dbl-buf in/out tiles + two f32 VMEM scratches + dbl-buf resident weights.
    per_ch = 2 * h * w * x_item + 2 * oh * ow * x_item + 2 * h * ow * 4
    fixed = 2 * (oh * h + w * ow) * w_item
    avail = max(budget - fixed, per_ch)
    tb = int(max(1, min(nc, avail // per_ch)))
    tb = min(tb, 32)   # bound the static relayout unroll / masked-store count
    num_blocks = -(-nc // tb)
    return tb, num_blocks


# ----------------------------------------------------------------------------
# Kernels.
# ----------------------------------------------------------------------------
def _kron_kernel(x_ref, kt_ref, o_ref):
    # x_ref: (TB, H*W) channel block; kt_ref: (H*W, OH*OW) resident Kronecker weight;
    # o_ref: (TB, OH*OW).  Single MXU matmul, H*W on the contraction dim, f32 acc.
    o_ref[...] = jnp.dot(x_ref[...], kt_ref[...],
                         preferred_element_type=jnp.float32).astype(o_ref.dtype)


def _separable_kernel(x_ref, wh_ref, wwt_ref, o_ref, tmp_ref, t_ref, *, tb, h, ow):
    # x_ref:  (1, TB*H, W)   block of TB channels, rows stacked
    # wh_ref: (OH, H), wwt_ref: (W, OW)   resident weights
    # o_ref:  (1, OH, TB*OW) lane-dense output slab
    # tmp_ref:(TB*H, OW) f32 scratch  (first contraction result; bounds live range)
    # t_ref:  (H, TB*OW) f32 scratch  (relayout slab)
    tmp_ref[...] = jnp.dot(x_ref[0], wwt_ref[...],
                           preferred_element_type=jnp.float32)
    # Relayout (TB, H, OW) -> (H, TB*OW) ref-to-ref so the second contraction is one
    # lane-dense MXU matmul; tb is capped so the static unroll stays small.
    for b in range(tb):
        t_ref[:, b * ow:(b + 1) * ow] = tmp_ref[b * h:(b + 1) * h, :]
    out = jnp.dot(wh_ref[...].astype(jnp.float32), t_ref[...],
                  preferred_element_type=jnp.float32)
    o_ref[0] = out.astype(o_ref.dtype)


# ----------------------------------------------------------------------------
# Wrapper.
# ----------------------------------------------------------------------------
def aa_bilinear_interp(x, size=None, scale_factor=None):
    """Forward pass of AABilinearInterp. x: (N, C, H, W)."""
    assert size is not None or scale_factor is not None
    N, C, H, W = x.shape
    if size is not None:
        OH, OW = (size, size) if isinstance(size, int) else tuple(size)
    else:
        if isinstance(scale_factor, (int, float)):
            sfh = sfw = float(scale_factor)
        else:
            sfh, sfw = scale_factor
        OH, OW = int(math.floor(H * sfh)), int(math.floor(W * sfw))

    x_item = jnp.dtype(x.dtype).itemsize
    w_dtype = x.dtype if jnp.issubdtype(x.dtype, jnp.floating) else jnp.float32
    w_item = jnp.dtype(w_dtype).itemsize

    cap = _vmem_capacity_bytes()
    budget = min(cap // 2, 48 * _MIB)            # working-set budget (incl. dbl-buffer)
    vmem_limit = int(min(cap - 4 * _MIB, budget + 16 * _MIB))

    wh = _aa_linear_weights(H, OH)               # (OH, H), f32
    ww = _aa_linear_weights(W, OW)               # (OW, W), f32

    NC, HW, OHOW = N * C, H * W, OH * OW

    # ---------------- Kronecker (single-matmul) path: small spatial sizes -----------
    if HW * OHOW * w_item <= 4 * _MIB:
        kt = jnp.kron(wh, ww).T.astype(w_dtype)  # (H*W, OH*OW), column = one output px
        TB, num_blocks = _choose_channels_kron(NC, HW, OHOW, x_item, w_item, budget)
        NC_pad = TB * num_blocks
        x2 = x.reshape(NC, HW)                   # pure reshape (row-major (h,w))
        if NC_pad != NC:
            x2 = jnp.pad(x2, ((0, NC_pad - NC), (0, 0)))
        out = pl.pallas_call(
            _kron_kernel,
            out_shape=jax.ShapeDtypeStruct((NC_pad, OHOW), x.dtype),
            grid_spec=pltpu.PrefetchScalarGridSpec(
                num_scalar_prefetch=0,
                grid=(num_blocks,),
                in_specs=[
                    pl.BlockSpec((TB, HW), lambda b: (b, 0)),
                    pl.BlockSpec((HW, OHOW), lambda b: (0, 0)),   # grid-invariant
                ],
                out_specs=pl.BlockSpec((TB, OHOW), lambda b: (b, 0)),
            ),
            compiler_params=pltpu.CompilerParams(
                dimension_semantics=("parallel",),
                vmem_limit_bytes=vmem_limit,
            ),
        )(x2, kt)
        return out[:NC].reshape(N, C, OH, OW)    # pure reshape, no transpose pass

    # ---------------- Separable fallback path: large spatial sizes ------------------
    whc = wh.astype(w_dtype)                     # (OH, H)
    wwt = ww.T.astype(w_dtype)                   # (W, OW)
    TB, num_blocks = _choose_channels_separable(NC, H, W, OH, OW, x_item, w_item, budget)
    NC_pad = TB * num_blocks
    xf = x.reshape(NC, H, W)
    if NC_pad != NC:
        xf = jnp.pad(xf, ((0, NC_pad - NC), (0, 0), (0, 0)))
    x3 = xf.reshape(num_blocks, TB * H, W)       # block b holds TB channels stacked
    kernel = functools.partial(_separable_kernel, tb=TB, h=H, ow=OW)
    out = pl.pallas_call(
        kernel,
        out_shape=jax.ShapeDtypeStruct((num_blocks, OH, TB * OW), x.dtype),
        grid_spec=pltpu.PrefetchScalarGridSpec(
            num_scalar_prefetch=0,
            grid=(num_blocks,),
            in_specs=[
                pl.BlockSpec((1, TB * H, W), lambda b: (b, 0, 0)),
                pl.BlockSpec((OH, H), lambda b: (0, 0)),
                pl.BlockSpec((W, OW), lambda b: (0, 0)),
            ],
            out_specs=pl.BlockSpec((1, OH, TB * OW), lambda b: (b, 0, 0)),
            scratch_shapes=[
                pltpu.VMEM((TB * H, OW), jnp.float32),
                pltpu.VMEM((H, TB * OW), jnp.float32),
            ],
        ),
        compiler_params=pltpu.CompilerParams(
            dimension_semantics=("parallel",),
            vmem_limit_bytes=vmem_limit,
        ),
    )(x3, whc, wwt)
    # TODO(synk): when OW >= 128, emit (TB, OH, OW) blocks directly and drop this
    # wrapper-side relayout pass (extra HBM read+write of the output).
    out = out.reshape(num_blocks, OH, TB, OW).transpose(0, 2, 1, 3)
    return out.reshape(NC_pad, OH, OW)[:NC].reshape(N, C, OH, OW)


if __name__ == "__main__":
    key = jax.random.PRNGKey(0)
    x = jax.random.normal(key, (2, 4, 16, 16), dtype=jnp.float32)

    # AABilinearInterp(size=8): 16x16 -> 8x8 downsample (exercises the widened
    # anti-alias filter, scale > 1).
    y = aa_bilinear_interp(x, size=8)
    y = jax.block_until_ready(y)
    assert y.shape == (2, 4, 8, 8), y.shape

    # Pure-JAX reference with the same separable weights (forced full precision so
    # the reference is not the lossy side).  Tolerance allows for MXU f32
    # pass-decomposition differences while still catching layout/weight bugs.
    wh = _aa_linear_weights(16, 8)
    ww = _aa_linear_weights(16, 8)
    ref = jnp.einsum("oh,nchw,pw->ncop", wh, x, ww,
                     precision=jax.lax.Precision.HIGHEST)
    err = float(jnp.max(jnp.abs(y - ref)))
    assert err < 2e-2, err

    # AABilinearInterp(scale_factor=2): 16x16 -> 32x32 upsample path.
    y2 = aa_bilinear_interp(x, scale_factor=2)
    y2 = jax.block_until_ready(y2)
    assert y2.shape == (2, 4, 32, 32), y2.shape
    wh2 = _aa_linear_weights(16, 32)
    ww2 = _aa_linear_weights(16, 32)
    ref2 = jnp.einsum("oh,nchw,pw->ncop", wh2, x, ww2,
                      precision=jax.lax.Precision.HIGHEST)
    err2 = float(jnp.max(jnp.abs(y2 - ref2)))
    assert err2 < 2e-2, err2

    print("KERNEL_OK")
</pallas_src>

<mosaic_0001>
module attributes {stable_mosaic.version = 11 : i64} {
  func.func @_kron_kernel(%arg0: i32, %arg1: memref<8x256xf32, #tpu.memory_space<vmem>>, %arg2: memref<256x64xf32, #tpu.memory_space<vmem>>, %arg3: memref<8x64xf32, #tpu.memory_space<vmem>>) attributes {dimension_semantics = [#tpu.dimension_semantics<parallel>], iteration_bounds = array<i64: 1>, scalar_prefetch = 0 : i64, scratch_operands = 0 : i64, tpu.core_type = #tpu.core_type<tc>, window_params = [{transform_indices = @transform_0, window_bounds = array<i64: 8, 256>}, {pipeline_mode = #tpu.pipeline_mode<synchronous>, transform_indices = @transform_1, window_bounds = array<i64: 256, 64>}, {transform_indices = @transform_2, window_bounds = array<i64: 8, 64>}]} {
    %c0 = arith.constant 0 : index
    %c0_0 = arith.constant 0 : index
    %0 = vector.load %arg1[%c0, %c0_0] : memref<8x256xf32, #tpu.memory_space<vmem>>, vector<8x256xf32>
    %c0_1 = arith.constant 0 : index
    %c0_2 = arith.constant 0 : index
    %1 = vector.load %arg2[%c0_1, %c0_2] : memref<256x64xf32, #tpu.memory_space<vmem>>, vector<256x64xf32>
    %cst = arith.constant dense<0.000000e+00> : vector<8x64xf32>
    %2 = tpu.matmul %0, %1, %cst {dimension_numbers = #tpu.dot_dimension_numbers<[1], [0], [0], [1], [0, 0, 1, 1], [], []>} : vector<8x256xf32>, vector<256x64xf32>, vector<8x64xf32> -> vector<8x64xf32>
    %c0_3 = arith.constant 0 : index
    %c0_4 = arith.constant 0 : index
    %3 = vector.load %arg3[%c0_3, %c0_4] : memref<8x64xf32, #tpu.memory_space<vmem>>, vector<8x64xf32>
    tpu.vector_store %arg3[%c0_3, %c0_4], %2 {strides = array<i32>} : memref<8x64xf32, #tpu.memory_space<vmem>>, vector<8x64xf32>,
    return
  }
  func.func @transform_0(%arg0: i32) -> (i32, i32) {
    %c0_i32 = arith.constant 0 : i32
    %c0_i32_0 = arith.constant 0 : i32
    return %arg0, %c0_i32 : i32, i32
  }
  func.func @transform_1(%arg0: i32) -> (i32, i32) {
    %c0_i32 = arith.constant 0 : i32
    %c0_i32_0 = arith.constant 0 : i32
    %c0_i32_1 = arith.constant 0 : i32
    return %c0_i32, %c0_i32_0 : i32, i32
  }
  func.func @transform_2(%arg0: i32) -> (i32, i32) {
    %c0_i32 = arith.constant 0 : i32
    %c0_i32_0 = arith.constant 0 : i32
    return %arg0, %c0_i32 : i32, i32
  }
}

</mosaic_0001>

<bundles_post_ra>
// kernel: tpu_custom_call.1
= control target key start
LH: loop header
LB: loop body
LE: loop exit
PB: predicated region body
PF: predicated region fallthrough
CT: control target
= control target key end

     0   :  { %s311_s0 = inlined_call_operand.vmem [shape: f32[8,256], index: 0, kind: input, shape index: {}]   ;;  %s312_s1 = inlined_call_operand.vmem [shape: f32[256,64], index: 1, kind: input, shape index: {}]   ;;  %s313_s2 = inlined_call_operand.hbm [shape: f32[8,64], index: 2, kind: output, shape index: {}]  }
   0x1   :  { %v45_v0 = vld [vmem:[%s312_s1 + $0xf8] sm:$0xff]  ;;  %v44_v2 = vld [vmem:[%s312_s1 + $0xf0] sm:$0xff]  ;;  %v43_v4 = vld [vmem:[%s312_s1 + $0xe8] sm:$0xff] }
   0x2   :  { %v29_v1 = vld [vmem:[%s312_s1 + $0x78] sm:$0xff]  ;;  %132 = vmatprep.subr.mxu0 %v45_v0  ;;  %v28_v3 = vld [vmem:[%s312_s1 + $0x70] sm:$0xff]  ;;  %v27_v5 = vld [vmem:[%s312_s1 + $0x68] sm:$0xff] }
   0x3   :  { %133 = vmatpush3.msra.mxu0 %v29_v1  ;;  %v42_v6 = vld [vmem:[%s312_s1 + $0xe0] sm:$0xff]  ;;  %v41_v8 = vld [vmem:[%s312_s1 + $0xd8] sm:$0xff]  ;;  %v40_v10 = vld [vmem:[%s312_s1 + $0xd0] sm:$0xff] }
   0x4   :  { %134 = vmatprep.subr.mxu0 %v44_v2  ;;  %v26_v7 = vld [vmem:[%s312_s1 + $0x60] sm:$0xff]  ;;  %v25_v9 = vld [vmem:[%s312_s1 + $0x58] sm:$0xff]  ;;  %v24_v11 = vld [vmem:[%s312_s1 + $0x50] sm:$0xff] }
   0x5   :  { %135 = vmatpush3.msra.mxu0 %v28_v3  ;;  %v39_v12 = vld [vmem:[%s312_s1 + $0xc8] sm:$0xff] }
   0x6   :  { %136 = vmatprep.subr.mxu0 %v43_v4  ;;  %v13_v13 = vld [vmem:[%s311_s0 + $0x8] sm:$0xff] }
   0x7   :  { %137 = vmatpush3.msra.mxu0 %v27_v5  ;;  %v23_v14 = vld [vmem:[%s312_s1 + $0x48] sm:$0xff]  ;;  %110 = vmatprep.mubr.f32.mxu0 %v13_v13 }
   0x8   :  { %138 = vmatprep.subr.mxu0 %v42_v6 }
   0x9   :  { %139 = vmatpush3.msra.mxu0 %v26_v7 }
   0xa   :  { %140 = vmatprep.subr.mxu0 %v41_v8 }
   0xb   :  { %141 = vmatpush3.msra.mxu0 %v25_v9 }
   0xc   :  { %142 = vmatprep.subr.mxu0 %v40_v10 }
   0xd   :  { %7 = vsyncpa [#allocation3], 0  ;;  %143 = vmatpush3.msra.mxu0 %v24_v11  ;;  %v38_v15 = vld [vmem:[%s312_s1 + $0xc0] sm:$0xff]  ;;  %v37_v17 = vld [vmem:[%s312_s1 + $0xb8] sm:$0xff]  ;;  %s190_s21 = smov [#allocation2]   ;;  %vm116_vm0 = vcmask 523264  }
   0xe   :  { %144 = vmatprep.subr.mxu0 %v39_v12  ;;  %v22_v16 = vld [vmem:[%s312_s1 + $0x40] sm:$0xff]  ;;  %v21_v18 = vld [vmem:[%s312_s1 + $0x38] sm:$0xff]  ;;  %v36_v19 = vld [vmem:[%s312_s1 + $0xb0] sm:$0xff]  ;;  %s124_s22 = sshll.u32 %s190_s21, 4  ;;  %s125_s22 = int_to_ptr.vmem [resolvable:$true] %s124_s22 }
   0xf   :  { %145 = vmatpush3.msra.mxu0 %v23_v14  ;;  %v20_v20 = vld [vmem:[%s312_s1 + $0x30] sm:$0xff]  ;;  %v35_v21 = vld [vmem:[%s312_s1 + $0xa8] sm:$0xff]  ;;  %v34_v23 = vld [vmem:[%s312_s1 + $0xa0] sm:$0xff]  ;;  %s168_s23 = scalar_lea.vmem %s125_s22, 128  ;;  %p173_p1 = scmp.lt.s32.totalorder %s125_s22, %s125_s22 }
  0x10   :  { %146 = vmatprep.subr.mxu0 %v38_v15  ;;  %v19_v22 = vld [vmem:[%s312_s1 + $0x28] sm:$0xff]  ;;  %v18_v24 = vld [vmem:[%s312_s1 + $0x20] sm:$0xff]  ;;  %v33_v25 = vld [vmem:[%s312_s1 + $0x98] sm:$0xff]  ;;  %p169_p0 = scmp.ne.s32.totalorder %s125_s22, %s168_s23  ;;  %p174_p2 = scmp.lt.s32.totalorder %s168_s23, %s168_s23 }
  0x11   :  { %147 = vmatpush3.msra.mxu0 %v22_v16  ;;  %v17_v26 = vld [vmem:[%s312_s1 + $0x18] sm:$0xff]  ;;  %v32_v27 = vld [vmem:[%s312_s1 + $0x90] sm:$0xff]  ;;  %v31_v29 = vld [vmem:[%s312_s1 + $0x88] sm:$0xff] }
  0x12   :  { %148 = vmatprep.subr.mxu0 %v37_v17  ;;  %v16_v28 = vld [vmem:[%s312_s1 + $0x10] sm:$0xff]  ;;  %v15_v30 = vld [vmem:[%s312_s1 + $0x8] sm:$0xff]  ;;  %v30_v31 = vld [vmem:[%s312_s1 + $0x80] sm:$0xff]  ;;  %p175_p3 = por %p174_p2, %p173_p1 }
  0x13   :  { %149 = vmatpush3.msra.mxu0 %v21_v18  ;;  %v14_v32 = vld [vmem:[%s312_s1] sm:$0xff] }
  0x14   :  { %150 = vmatprep.subr.mxu0 %v36_v19  ;;  %v12_v33 = vld [vmem:[%s311_s0] sm:$0xff]  ;;  %p176_p4 = pnand %p175_p3, %p169_p0 }
  0x15   :  { %151 = vmatpush3.msra.mxu0 %v20_v20 }
  0x16   :  { %152 = vmatprep.subr.mxu0 %v35_v21 }
  0x17   :  { %153 = vmatpush3.msra.mxu0 %v19_v22 }
  0x18   :  { %154 = vmatprep.subr.mxu0 %v34_v23 }
  0x19   :  { %155 = vmatpush3.msra.mxu0 %v18_v24 }
  0x1a   :  { %156 = vmatprep.subr.mxu0 %v33_v25 }
  0x1b   :  { %157 = vmatpush3.msra.mxu0 %v17_v26 }
  0x1c   :  { %158 = vmatprep.subr.mxu0 %v32_v27 }
  0x1d   :  { %159 = vmatpush3.msra.mxu0 %v16_v28 }
  0x1e   :  { %160 = vmatprep.subr.mxu0 %v31_v29 }
  0x1f   :  { %161 = vmatpush3.msra.mxu0 %v15_v30 }
  0x20   :  { %162 = vmatprep.subr.mxu0 %v30_v31 }
  0x21   :  { %163 = vmatpush3.msra.mxu0 %v14_v32 }
  0x22   :  { %111 = vmatmul.mubr.f32.vlgmr.msra.gmra.mxu0 %v12_v33 }
  0xe2   :  { %v164_v34 = vpop.f32.mrf.mxu0 }
  0xe4   :  { %v165_v35 = vpop.f32.mrf.mxu0 }
  0xe5   :  { %v166_v36 = vadd.f32 %v165_v35, %v164_v34 }
  0xe7   :  { %117 = vst.msk [vmem:[#allocation2] sm:$0xff] %vm116_vm0, %v166_v36 }
  0xe8   :  { %179 = shalt.err (!%p176_p4)
}
  0xe9   :  { %127 = dma.vmem_to_hbm [thread:$0]  %s125_s22, 128, %s313_s2, [#allocation3]  }
  0xea   :  { %188 = dma.done.wait [#allocation3], 128  }
  0xeb   :  { %189 = vsyncadd [#allocation3], 4294967168 }
  0xec   :  { %131 = vsyncpa [#allocation3], 1 }

</bundles_post_ra>
